<compile_context>
chip_gen: v5e
topology: v5e:2x2
jax: 0.10.0
libtpu: 0.0.40
codegen_flags: <defaults>
</compile_context>

<pallas_src>
import jax
import jax.numpy as jnp
from jax.experimental import pallas as pl
from jax.experimental.pallas import tpu as pltpu


def _state_value_kernel(x_ref, w1_ref, b1_ref, w2_ref, b2_ref, w3_ref, b3_ref,
                        o_ref):
    xT = x_ref[...]                       # (4, TB)   batch on the lane axis
    w1t = w1_ref[...]                     # (128, 4)

    # Layer 1 (K=4): off the MXU -- four broadcast multiply-adds on the VPU,
    # with the bias folded into the accumulator initialization.
    h1 = b1_ref[...] + w1t[:, 0:1] * xT[0:1, :]          # (128, TB)
    for k in range(1, xT.shape[0]):
        h1 = h1 + w1t[:, k:k + 1] * xT[k:k + 1, :]
    h1 = jnp.maximum(h1, 0.0)                            # ReLU, (128, TB)

    # Layer 2: dominant matmul on the MXU. (256,128) @ (128,TB) -> (256,TB).
    h2 = jnp.dot(w2_ref[...], h1, preferred_element_type=jnp.float32)
    h2 = jnp.maximum(h2 + b2_ref[...], 0.0)              # (256, TB)

    # Layer 3 (N=1): off the MXU -- VPU multiply + sublane reduce on the XLU.
    out = jnp.sum(h2 * w3_ref[...], axis=0, keepdims=True)   # (1, TB)
    o_ref[...] = (out + b3_ref[0]).astype(o_ref.dtype)


def _round_up(n, m):
    return ((n + m - 1) // m) * m


def state_value_forward(x, params, *, block_b=1024):
    """x: (B, 4) float32.  Returns (B, 1) float32 state-value estimates."""
    w1, b1, w2, b2, w3, b3 = params
    B, F_in = x.shape

    # Batch tile: multiple of 128 (lane width). 1024 amortizes the ~0.35us
    # per-grid-step overhead while keeping VMEM use < 2 MiB per step.
    TB = min(block_b, _round_up(B, 128))
    B_pad = _round_up(B, TB)

    # Feature-major (batch-on-lanes) operands.
    x_t = jnp.pad(x, ((0, B_pad - B), (0, 0))).T                 # (4, B_pad)
    w1_t = w1.T                                                  # (128, 4)
    b1_c = b1.T                                                  # (128, 1)
    w2_t = w2.T                                                  # (256, 128)
    b2_c = b2.T                                                  # (256, 1)
    w3_c = w3                                                    # (256, 1)
    b3_s = b3.reshape(-1)                                        # (1,)

    def resident(shape):
        # Same block every grid step -> stays VMEM-resident (no re-DMA).
        return pl.BlockSpec(shape, lambda i: (0,) * len(shape))

    out = pl.pallas_call(
        _state_value_kernel,
        out_shape=jax.ShapeDtypeStruct((1, B_pad), jnp.float32),
        grid_spec=pl.GridSpec(
            grid=(B_pad // TB,),
            in_specs=[
                pl.BlockSpec((F_in, TB), lambda i: (0, i)),      # x tile
                resident(w1_t.shape), resident(b1_c.shape),
                resident(w2_t.shape), resident(b2_c.shape),
                resident(w3_c.shape),
                pl.BlockSpec(memory_space=pltpu.MemorySpace.SMEM),  # b3 scalar
            ],
            out_specs=pl.BlockSpec((1, TB), lambda i: (0, i)),   # lane-dense
        ),
        compiler_params=pltpu.CompilerParams(
            dimension_semantics=("parallel",)),   # shard batch over v7x's 2 TCs
    )(x_t, w1_t, b1_c, w2_t, b2_c, w3_c, b3_s)

    return out[0, :B][:, None]


def init_params(key):
    """nn.Linear-shaped params (4->128, 128->256, 256->1), stored (in, out)."""
    ks = jax.random.split(key, 6)

    def linear(kw, kb, fan_in, fan_out):
        bound = 1.0 / jnp.sqrt(float(fan_in))
        w = jax.random.uniform(kw, (fan_in, fan_out), jnp.float32, -bound, bound)
        b = jax.random.uniform(kb, (1, fan_out), jnp.float32, -bound, bound)
        return w, b

    w1, b1 = linear(ks[0], ks[1], 4, 128)
    w2, b2 = linear(ks[2], ks[3], 128, 256)
    w3, b3 = linear(ks[4], ks[5], 256, 1)
    return (w1, b1, w2, b2, w3, b3)


def _reference_forward(x, params):
    w1, b1, w2, b2, w3, b3 = params
    h1 = jnp.maximum(x @ w1 + b1, 0.0)
    h2 = jnp.maximum(h1 @ w2 + b2, 0.0)
    return h2 @ w3 + b3


if __name__ == "__main__":
    key = jax.random.PRNGKey(0)
    k_params, k_x, k_x2, k_x3 = jax.random.split(key, 4)

    params = init_params(k_params)

    # CartPole-style input: batch of 8 observations with 4 features.
    x = jax.random.normal(k_x, (8, 4), dtype=jnp.float32)
    out = jax.block_until_ready(state_value_forward(x, params))
    ref = _reference_forward(x, params)
    assert out.shape == (8, 1)
    assert jnp.allclose(out, ref, atol=1e-4, rtol=1e-4)

    # A non-multiple-of-128 batch to exercise padding.
    x2 = jax.random.normal(k_x2, (1000, 4), dtype=jnp.float32)
    out2 = jax.block_until_ready(state_value_forward(x2, params))
    ref2 = _reference_forward(x2, params)
    assert out2.shape == (1000, 1)
    assert jnp.allclose(out2, ref2, atol=1e-4, rtol=1e-4)

    # A batch larger than the tile to exercise a multi-step pipelined grid.
    x3 = jax.random.normal(k_x3, (3000, 4), dtype=jnp.float32)
    out3 = jax.block_until_ready(state_value_forward(x3, params))
    ref3 = _reference_forward(x3, params)
    assert out3.shape == (3000, 1)
    assert jnp.allclose(out3, ref3, atol=1e-4, rtol=1e-4)

    print("KERNEL_OK")
</pallas_src>

<mosaic_0001>
module attributes {stable_mosaic.version = 11 : i64} {
  func.func @_state_value_kernel(%arg0: i32, %arg1: memref<4x128xf32, #tpu.memory_space<vmem>>, %arg2: memref<128x4xf32, #tpu.memory_space<vmem>>, %arg3: memref<128x1xf32, #tpu.memory_space<vmem>>, %arg4: memref<256x128xf32, #tpu.memory_space<vmem>>, %arg5: memref<256x1xf32, #tpu.memory_space<vmem>>, %arg6: memref<256x1xf32, #tpu.memory_space<vmem>>, %arg7: memref<1xf32, #tpu.memory_space<smem>>, %arg8: memref<1x128xf32, #tpu.memory_space<vmem>>) attributes {dimension_semantics = [#tpu.dimension_semantics<parallel>], iteration_bounds = array<i64: 1>, scalar_prefetch = 0 : i64, scratch_operands = 0 : i64, tpu.core_type = #tpu.core_type<tc>, window_params = [{transform_indices = @transform_0, window_bounds = array<i64: 4, 128>}, {pipeline_mode = #tpu.pipeline_mode<synchronous>, transform_indices = @transform_1, window_bounds = array<i64: 128, 4>}, {pipeline_mode = #tpu.pipeline_mode<synchronous>, transform_indices = @transform_2, window_bounds = array<i64: 128, 1>}, {pipeline_mode = #tpu.pipeline_mode<synchronous>, transform_indices = @transform_3, window_bounds = array<i64: 256, 128>}, {pipeline_mode = #tpu.pipeline_mode<synchronous>, transform_indices = @transform_4, window_bounds = array<i64: 256, 1>}, {pipeline_mode = #tpu.pipeline_mode<synchronous>, transform_indices = @transform_5, window_bounds = array<i64: 256, 1>}, {transform_indices = @transform_6, window_bounds = array<i64: 1>}, {transform_indices = @transform_7, window_bounds = array<i64: 1, 128>}]} {
    %c0 = arith.constant 0 : index
    %c0_0 = arith.constant 0 : index
    %0 = vector.load %arg1[%c0, %c0_0] : memref<4x128xf32, #tpu.memory_space<vmem>>, vector<4x128xf32>
    %c0_1 = arith.constant 0 : index
    %c0_2 = arith.constant 0 : index
    %1 = vector.load %arg2[%c0_1, %c0_2] : memref<128x4xf32, #tpu.memory_space<vmem>>, vector<128x4xf32>
    %c0_3 = arith.constant 0 : index
    %c0_4 = arith.constant 0 : index
    %2 = vector.load %arg3[%c0_3, %c0_4] : memref<128x1xf32, #tpu.memory_space<vmem>>, vector<128x1xf32>
    %3 = vector.extract_strided_slice %1 {offsets = [0, 0], sizes = [128, 1], strides = [1, 1]} : vector<128x4xf32> to vector<128x1xf32>
    %4 = vector.extract_strided_slice %0 {offsets = [0, 0], sizes = [1, 128], strides = [1, 1]} : vector<4x128xf32> to vector<1x128xf32>
    %5 = vector.broadcast %3 : vector<128x1xf32> to vector<128x128xf32>
    %6 = vector.broadcast %4 : vector<1x128xf32> to vector<128x128xf32>
    %7 = arith.mulf %5, %6 : vector<128x128xf32>
    %8 = vector.broadcast %2 : vector<128x1xf32> to vector<128x128xf32>
    %9 = arith.addf %8, %7 : vector<128x128xf32>
    %10 = vector.extract_strided_slice %1 {offsets = [0, 1], sizes = [128, 1], strides = [1, 1]} : vector<128x4xf32> to vector<128x1xf32>
    %11 = vector.extract_strided_slice %0 {offsets = [1, 0], sizes = [1, 128], strides = [1, 1]} : vector<4x128xf32> to vector<1x128xf32>
    %12 = vector.broadcast %10 : vector<128x1xf32> to vector<128x128xf32>
    %13 = vector.broadcast %11 : vector<1x128xf32> to vector<128x128xf32>
    %14 = arith.mulf %12, %13 : vector<128x128xf32>
    %15 = arith.addf %9, %14 : vector<128x128xf32>
    %16 = vector.extract_strided_slice %1 {offsets = [0, 2], sizes = [128, 1], strides = [1, 1]} : vector<128x4xf32> to vector<128x1xf32>
    %17 = vector.extract_strided_slice %0 {offsets = [2, 0], sizes = [1, 128], strides = [1, 1]} : vector<4x128xf32> to vector<1x128xf32>
    %18 = vector.broadcast %16 : vector<128x1xf32> to vector<128x128xf32>
    %19 = vector.broadcast %17 : vector<1x128xf32> to vector<128x128xf32>
    %20 = arith.mulf %18, %19 : vector<128x128xf32>
    %21 = arith.addf %15, %20 : vector<128x128xf32>
    %22 = vector.extract_strided_slice %1 {offsets = [0, 3], sizes = [128, 1], strides = [1, 1]} : vector<128x4xf32> to vector<128x1xf32>
    %23 = vector.extract_strided_slice %0 {offsets = [3, 0], sizes = [1, 128], strides = [1, 1]} : vector<4x128xf32> to vector<1x128xf32>
    %24 = vector.broadcast %22 : vector<128x1xf32> to vector<128x128xf32>
    %25 = vector.broadcast %23 : vector<1x128xf32> to vector<128x128xf32>
    %26 = arith.mulf %24, %25 : vector<128x128xf32>
    %27 = arith.addf %21, %26 : vector<128x128xf32>
    %cst = arith.constant 0.000000e+00 : f32
    %28 = vector.broadcast %cst : f32 to vector<128x128xf32>
    %29 = arith.maximumf %27, %28 : vector<128x128xf32>
    %c0_5 = arith.constant 0 : index
    %c0_6 = arith.constant 0 : index
    %30 = vector.load %arg4[%c0_5, %c0_6] : memref<256x128xf32, #tpu.memory_space<vmem>>, vector<256x128xf32>
    %cst_7 = arith.constant dense<0.000000e+00> : vector<256x128xf32>
    %31 = tpu.matmul %30, %29, %cst_7 {dimension_numbers = #tpu.dot_dimension_numbers<[1], [0], [0], [1], [0, 0, 1, 1], [], []>} : vector<256x128xf32>, vector<128x128xf32>, vector<256x128xf32> -> vector<256x128xf32>
    %c0_8 = arith.constant 0 : index
    %c0_9 = arith.constant 0 : index
    %32 = vector.load %arg5[%c0_8, %c0_9] : memref<256x1xf32, #tpu.memory_space<vmem>>, vector<256x1xf32>
    %33 = vector.broadcast %32 : vector<256x1xf32> to vector<256x128xf32>
    %34 = arith.addf %31, %33 : vector<256x128xf32>
    %cst_10 = arith.constant 0.000000e+00 : f32
    %35 = vector.broadcast %cst_10 : f32 to vector<256x128xf32>
    %36 = arith.maximumf %34, %35 : vector<256x128xf32>
    %c0_11 = arith.constant 0 : index
    %c0_12 = arith.constant 0 : index
    %37 = vector.load %arg6[%c0_11, %c0_12] : memref<256x1xf32, #tpu.memory_space<vmem>>, vector<256x1xf32>
    %38 = vector.broadcast %37 : vector<256x1xf32> to vector<256x128xf32>
    %39 = arith.mulf %36, %38 : vector<256x128xf32>
    %cst_13 = arith.constant dense<0.000000e+00> : vector<128xf32>
    %40 = vector.multi_reduction <add>, %39, %cst_13 [0] : vector<256x128xf32> to vector<128xf32>
    %41 = vector.shape_cast %40 : vector<128xf32> to vector<1x128xf32>
    %c0_14 = arith.constant 0 : index
    %42 = memref.load %arg7[%c0_14] : memref<1xf32, #tpu.memory_space<smem>>
    %43 = vector.broadcast %42 : f32 to vector<1x128xf32>
    %44 = arith.addf %41, %43 : vector<1x128xf32>
    %c0_15 = arith.constant 0 : index
    %c0_16 = arith.constant 0 : index
    %45 = vector.load %arg8[%c0_15, %c0_16] : memref<1x128xf32, #tpu.memory_space<vmem>>, vector<1x128xf32>
    tpu.vector_store %arg8[%c0_15, %c0_16], %44 {strides = array<i32>} : memref<1x128xf32, #tpu.memory_space<vmem>>, vector<1x128xf32>,
    return
  }
  func.func @transform_0(%arg0: i32) -> (i32, i32) {
    %c0_i32 = arith.constant 0 : i32
    %c0_i32_0 = arith.constant 0 : i32
    return %c0_i32, %arg0 : i32, i32
  }
  func.func @transform_1(%arg0: i32) -> (i32, i32) {
    %c0_i32 = arith.constant 0 : i32
    %c0_i32_0 = arith.constant 0 : i32
    %c0_i32_1 = arith.constant 0 : i32
    return %c0_i32, %c0_i32_0 : i32, i32
  }
  func.func @transform_2(%arg0: i32) -> (i32, i32) {
    %c0_i32 = arith.constant 0 : i32
    %c0_i32_0 = arith.constant 0 : i32
    %c0_i32_1 = arith.constant 0 : i32
    return %c0_i32, %c0_i32_0 : i32, i32
  }
  func.func @transform_3(%arg0: i32) -> (i32, i32) {
    %c0_i32 = arith.constant 0 : i32
    %c0_i32_0 = arith.constant 0 : i32
    %c0_i32_1 = arith.constant 0 : i32
    return %c0_i32, %c0_i32_0 : i32, i32
  }
  func.func @transform_4(%arg0: i32) -> (i32, i32) {
    %c0_i32 = arith.constant 0 : i32
    %c0_i32_0 = arith.constant 0 : i32
    %c0_i32_1 = arith.constant 0 : i32
    return %c0_i32, %c0_i32_0 : i32, i32
  }
  func.func @transform_5(%arg0: i32) -> (i32, i32) {
    %c0_i32 = arith.constant 0 : i32
    %c0_i32_0 = arith.constant 0 : i32
    %c0_i32_1 = arith.constant 0 : i32
    return %c0_i32, %c0_i32_0 : i32, i32
  }
  func.func @transform_6(%arg0: i32) -> i32 {
    %c0_i32 = arith.constant 0 : i32
    %c0_i32_0 = arith.constant 0 : i32
    return %c0_i32 : i32
  }
  func.func @transform_7(%arg0: i32) -> (i32, i32) {
    %c0_i32 = arith.constant 0 : i32
    %c0_i32_0 = arith.constant 0 : i32
    return %c0_i32, %arg0 : i32, i32
  }
}

</mosaic_0001>

<bundles_post_ra>
// kernel: tpu_custom_call.1
= control target key start
LH: loop header
LB: loop body
LE: loop exit
PB: predicated region body
PF: predicated region fallthrough
CT: control target
= control target key end

     0   :  { %v1305_v3 = vmov 0   ;;  %s2199_s0 = inlined_call_operand.vmem [shape: f32[4,128], index: 0, kind: input, shape index: {}]   ;;  %s2200_s1 = inlined_call_operand.vmem [shape: f32[128,4], index: 1, kind: input, shape index: {}]   ;;  %s2201_s2 = inlined_call_operand.vmem [shape: f32[128,1], index: 2, kind: input, shape index: {}]   ;;  %s2202_s3 = inlined_call_operand.vmem [shape: f32[256,128], index: 3, kind: input, shape index: {}]   ;;  %s2203_s4 = inlined_call_operand.vmem [shape: f32[256,1], index: 4, kind: input, shape index: {}]   ;;  %s2204_s5 = inlined_call_operand.vmem [shape: f32[256,1], index: 5, kind: input, shape index: {}]   ;;  %s2205_s6 = inlined_call_operand.<no memory space> [shape: f32[1], index: 6, kind: input, shape index: {}]   ;;  %s2206_s7 = inlined_call_operand.hbm [shape: f32[1,128], index: 7, kind: output, shape index: {}]  }
   0x1   :  { %v1353_v0 = vld [vmem:[%s2200_s1 + $0x20] sm:$0xff]  ;;  %v1358_v1 = vld [vmem:[%s2200_s1 + $0x10] sm:$0xff]  ;;  %1266 = vset.pattern.permute.xlu2 %v1305_v3  ;;  %1265 = vset.pattern.permute.xlu1 %v1305_v3 }
   0x2   :  { %v1363_v2 = vld [vmem:[%s2200_s1] sm:$0xff]  ;;  %1264 = vset.pattern.permute.xlu0 %v1305_v3  ;;  %83 = vperm.xlu2 %1266, %v1353_v0  }
   0x3   :  { %73 = vperm.xlu1 %1265, %v1358_v1   ;;  %63 = vperm.xlu0 %1264, %v1363_v2  }
   0x4   :  { %13 = vsyncpa [#allocation4], 0  ;;  %v1374_v4 = vld [vmem:[%s2200_s1 + $0x28] sm:$0xff]  ;;  %v1379_v5 = vld [vmem:[%s2200_s1 + $0x18] sm:$0xff]  ;;  %v1306_v33 = vmov 1   ;;  %v1307_v46 = vmov 2  }
   0x5   :  { %v1384_v6 = vld [vmem:[%s2200_s1 + $0x8] sm:$0xff]  ;;  %v1392_v7 = vld [vmem:[%s2200_s1 + $0x40] sm:$0xff]  ;;  %v1397_v8 = vld [vmem:[%s2200_s1 + $0x38] sm:$0xff]  ;;  %s1309_s21 = smov [#allocation3]   ;;  %s1202_s25 = sshll.u32 %s2206_s7, 4  ;;  %s1203_s25 = int_to_ptr.hbm [resolvable:$true] %s1202_s25 }
   0x6   :  { %v1402_v9 = vld [vmem:[%s2200_s1 + $0x30] sm:$0xff]  ;;  %v1410_v10 = vld [vmem:[%s2200_s1 + $0x58] sm:$0xff]  ;;  %v1420_v12 = vld [vmem:[%s2200_s1 + $0x48] sm:$0xff]  ;;  %s1200_s22 = sshll.u32 %s1309_s21, 4  ;;  %s1201_s22 = int_to_ptr.vmem [resolvable:$true] %s1200_s22 }
   0x7   :  { %v1415_v11 = vld [vmem:[%s2200_s1 + $0x50] sm:$0xff]  ;;  %v1433_v14 = vld [vmem:[%s2200_s1 + $0x68] sm:$0xff]  ;;  %v1438_v15 = vld [vmem:[%s2200_s1 + $0x60] sm:$0xff] }
   0x8   :  { %v1428_v13 = vld [vmem:[%s2200_s1 + $0x70] sm:$0xff]  ;;  %v46_v16 = vld [vmem:[%s2201_s2 + $0x8] sm:$0xff]  ;;  %v45_v17 = vld [vmem:[%s2201_s2] sm:$0xff] }
   0x9   :  { %v1452_v18 = vld [vmem:[%s2200_s1 + $0x78] sm:$0xff]  ;;  %v49_v19 = vld [vmem:[%s2201_s2 + $0x20] sm:$0xff]  ;;  %v47_v21 = vld [vmem:[%s2201_s2 + $0x10] sm:$0xff] }
   0xa   :  { %88 = vperm.xlu2 %1266, %v1374_v4   ;;  %v48_v20 = vld [vmem:[%s2201_s2 + $0x18] sm:$0xff]  ;;  %v51_v23 = vld [vmem:[%s2201_s2 + $0x30] sm:$0xff]  ;;  %v50_v24 = vld [vmem:[%s2201_s2 + $0x28] sm:$0xff] }
   0xb   :  { %78 = vperm.xlu1 %1265, %v1379_v5   ;;  %68 = vperm.xlu0 %1264, %v1384_v6   ;;  %v52_v22 = vld [vmem:[%s2201_s2 + $0x38] sm:$0xff]  ;;  %v55_v25 = vld [vmem:[%s2201_s2 + $0x50] sm:$0xff]  ;;  %v54_v26 = vld [vmem:[%s2201_s2 + $0x48] sm:$0xff] }
   0xc   :  { %v53_v27 = vld [vmem:[%s2201_s2 + $0x40] sm:$0xff]  ;;  %v58_v28 = vld [vmem:[%s2201_s2 + $0x68] sm:$0xff]  ;;  %v56_v30 = vld [vmem:[%s2201_s2 + $0x58] sm:$0xff] }
   0xd   :  { %v57_v29 = vld [vmem:[%s2201_s2 + $0x60] sm:$0xff]  ;;  %v60_v31 = vld [vmem:[%s2201_s2 + $0x78] sm:$0xff]  ;;  %v59_v32 = vld [vmem:[%s2201_s2 + $0x70] sm:$0xff] }
   0xe   :  { %v1519_v40 = vld [vmem:[%s2199_s0] sm:$0xf] }
   0xf   :  { %v1527_v44 = vperm.slane %v1519_v40, 0 }
  0x12   :  { %103 = vperm.xlu2 %1266, %v1392_v7  }
  0x13   :  { %98 = vperm.xlu1 %1265, %v1397_v8   ;;  %93 = vperm.xlu0 %1264, %v1402_v9  }
  0x1a   :  { %118 = vperm.xlu2 %1266, %v1410_v10  }
  0x1b   :  { %113 = vperm.xlu1 %1265, %v1415_v11   ;;  %108 = vperm.xlu0 %1264, %v1420_v12  }
  0x22   :  { %133 = vperm.xlu2 %1266, %v1428_v13  }
  0x23   :  { %128 = vperm.xlu1 %1265, %v1433_v14   ;;  %123 = vperm.xlu0 %1264, %v1438_v15  }
  0x2a   :  { %165 = vperm.xlu2 %1266, %v46_v16  }
  0x2b   :  { %160 = vperm.xlu1 %1265, %v45_v17   ;;  %138 = vperm.xlu0 %1264, %v1452_v18  }
  0x32   :  { %180 = vperm.xlu2 %1266, %v49_v19  }
  0x33   :  { %175 = vperm.xlu1 %1265, %v48_v20   ;;  %170 = vperm.xlu0 %1264, %v47_v21  }
  0x3a   :  { %195 = vperm.xlu2 %1266, %v52_v22  }
  0x3b   :  { %190 = vperm.xlu1 %1265, %v51_v23   ;;  %185 = vperm.xlu0 %1264, %v50_v24  }
  0x42   :  { %210 = vperm.xlu2 %1266, %v55_v25  }
  0x43   :  { %205 = vperm.xlu1 %1265, %v54_v26   ;;  %200 = vperm.xlu0 %1264, %v53_v27  }
  0x4a   :  { %225 = vperm.xlu2 %1266, %v58_v28  }
  0x4b   :  { %220 = vperm.xlu1 %1265, %v57_v29   ;;  %215 = vperm.xlu0 %1264, %v56_v30   ;;  %v1308_v29 = vmov 3  }
  0x52   :  { %1267 = vset.pattern.permute.xlu2 %v1306_v33 }
  0x53   :  { %235 = vperm.xlu1 %1265, %v60_v31   ;;  %230 = vperm.xlu0 %1264, %v59_v32   ;;  %v1565_v31 = vperm.slane %v1519_v40, 1 }
  0x54   :  { %255 = vperm.xlu2 %1267, %v1363_v2  }
  0x5b   :  { %1269 = vset.pattern.permute.xlu1 %v1306_v33  ;;  %1268 = vset.pattern.permute.xlu0 %v1306_v33 }
  0x5c   :  { %263 = vperm.xlu1 %1269, %v1358_v1   ;;  %267 = vperm.xlu2 %1267, %v1379_v5   ;;  %v84_v34 = vpop.permute.xlu2 %83 }
  0x5d   :  { %259 = vperm.xlu0 %1268, %v1384_v6   ;;  %v146_v51 = vmul.f32 %v1527_v44, %v84_v34 }
  0x64   :  { %271 = vperm.xlu1 %1269, %v1353_v0   ;;  %275 = vperm.xlu2 %1267, %v1374_v4   ;;  %v1503_v35 = vpop.permute.xlu2 %88 }
  0x65   :  { %279 = vperm.xlu0 %1268, %v1402_v9   ;;  %v147_v32 = vmul.f32 %v1527_v44, %v1503_v35 }
  0x6c   :  { %283 = vperm.xlu1 %1269, %v1397_v8   ;;  %287 = vperm.xlu2 %1267, %v1392_v7   ;;  %v1508_v36 = vpop.permute.xlu2 %103 }
  0x6d   :  { %291 = vperm.xlu0 %1268, %v1420_v12   ;;  %v150_v35 = vmul.f32 %v1527_v44, %v1508_v36 }
  0x74   :  { %295 = vperm.xlu1 %1269, %v1415_v11   ;;  %299 = vperm.xlu2 %1267, %v1410_v10   ;;  %v1513_v37 = vpop.permute.xlu2 %118 }
  0x75   :  { %303 = vperm.xlu0 %1268, %v1438_v15   ;;  %v74_v38 = vpop.permute.xlu1 %73  ;;  %v64_v39 = vpop.permute.xlu0 %63  ;;  %v153_v36 = vmul.f32 %v1527_v44, %v1513_v37 }
  0x76   :  { %v142_v62 = vmul.f32 %v1527_v44, %v64_v39  ;;  %v144_v22 = vmul.f32 %v1527_v44, %v74_v38 }
  0x7c   :  { %307 = vperm.xlu1 %1269, %v1433_v14   ;;  %311 = vperm.xlu2 %1267, %v1428_v13   ;;  %v1523_v41 = vpop.permute.xlu2 %133 }
  0x7d   :  { %315 = vperm.xlu0 %1268, %v1452_v18   ;;  %v79_v42 = vpop.permute.xlu1 %78  ;;  %v69_v43 = vpop.permute.xlu0 %68  ;;  %v156_v37 = vmul.f32 %v1527_v44, %v1523_v41  ;;  %v594_v41 = vld [vmem:[%s2203_s4 + $0x8] sm:$0xff] }
  0x7e   :  { %v143_v45 = vmul.f32 %v1527_v44, %v69_v43  ;;  %v145_v23 = vmul.f32 %v1527_v44, %v79_v42 }
  0x84   :  { %1270 = vset.pattern.permute.xlu1 %v1307_v46  ;;  %1271 = vset.pattern.permute.xlu2 %v1307_v46  ;;  %v166_v47 = vpop.permute.xlu2 %165 }
  0x85   :  { %1272 = vset.pattern.permute.xlu0 %v1307_v46  ;;  %v1530_v48 = vadd.f32 %v166_v47, %v143_v45  ;;  %v99_v49 = vpop.permute.xlu1 %98  ;;  %352 = vperm.xlu1 %1270, %v1363_v2   ;;  %v94_v50 = vpop.permute.xlu0 %93 }
  0x86   :  { %356 = vperm.xlu2 %1271, %v1384_v6   ;;  %360 = vperm.xlu0 %1272, %v1358_v1   ;;  %v149_v56 = vmul.f32 %v1527_v44, %v99_v49  ;;  %v148_v33 = vmul.f32 %v1527_v44, %v94_v50 }
  0x8c   :  { %v181_v52 = vpop.permute.xlu2 %180 }
  0x8d   :  { %v1536_v53 = vadd.f32 %v181_v52, %v146_v51  ;;  %v114_v54 = vpop.permute.xlu1 %113  ;;  %364 = vperm.xlu1 %1270, %v1379_v5   ;;  %v109_v55 = vpop.permute.xlu0 %108 }
  0x8e   :  { %368 = vperm.xlu2 %1271, %v1353_v0   ;;  %380 = vperm.xlu0 %1272, %v1397_v8   ;;  %v152_v61 = vmul.f32 %v1527_v44, %v114_v54  ;;  %v151_v46 = vmul.f32 %v1527_v44, %v109_v55 }
  0x94   :  { %v196_v57 = vpop.permute.xlu2 %195 }
  0x95   :  { %v1542_v58 = vadd.f32 %v196_v57, %v149_v56  ;;  %v129_v59 = vpop.permute.xlu1 %128  ;;  %372 = vperm.xlu1 %1270, %v1374_v4   ;;  %v124_v60 = vpop.permute.xlu0 %123 }
  0x96   :  { %376 = vperm.xlu2 %1271, %v1402_v9   ;;  %392 = vperm.xlu0 %1272, %v1415_v11   ;;  %v155_v21 = vmul.f32 %v1527_v44, %v129_v59  ;;  %v154_v55 = vmul.f32 %v1527_v44, %v124_v60 }
  0x9c   :  { %v211_v63 = vpop.permute.xlu2 %210 }
  0x9d   :  { %v1549_v16 = vadd.f32 %v211_v63, %v152_v61  ;;  %v161_v17 = vpop.permute.xlu1 %160  ;;  %384 = vperm.xlu1 %1270, %v1392_v7   ;;  %v139_v19 = vpop.permute.xlu0 %138 }
  0x9e   :  { %v238_v20 = vadd.f32 %v161_v17, %v142_v62  ;;  %388 = vperm.xlu2 %1271, %v1420_v12   ;;  %404 = vperm.xlu0 %1272, %v1433_v14   ;;  %v157_v60 = vmul.f32 %v1527_v44, %v139_v19 }
  0xa4   :  { %v226_v24 = vpop.permute.xlu2 %225 }
  0xa5   :  { %v1557_v25 = vadd.f32 %v226_v24, %v155_v21  ;;  %v176_v26 = vpop.permute.xlu1 %175  ;;  %396 = vperm.xlu1 %1270, %v1410_v10   ;;  %v171_v27 = vpop.permute.xlu0 %170  ;;  %v599_v24 = vld [vmem:[%s2203_s4 + $0x30] sm:$0xff] }
  0xa6   :  { %v241_v28 = vadd.f32 %v176_v26, %v145_v23  ;;  %400 = vperm.xlu2 %1271, %v1438_v15   ;;  %1273 = vset.pattern.permute.xlu0 %v1308_v29  ;;  %v1561_v30 = vadd.f32 %v171_v27, %v144_v22 }
  0xa7   :  { %449 = vperm.xlu0 %1273, %v1363_v2  }
  0xad   :  { %v191_v34 = vpop.permute.xlu1 %190  ;;  %408 = vperm.xlu1 %1270, %v1428_v13   ;;  %v186_v38 = vpop.permute.xlu0 %185 }
  0xae   :  { %v1571_v39 = vadd.f32 %v191_v34, %v148_v33  ;;  %412 = vperm.xlu2 %1271, %v1452_v18   ;;  %v243_v42 = vadd.f32 %v186_v38, %v147_v32  ;;  %v256_v43 = vpop.permute.xlu2 %255  ;;  %v1642_v34 = vperm.slane %v1519_v40, 2 }
  0xaf   :  { %v319_v2 = vmul.f32 %v1565_v31, %v256_v43  ;;  %469 = vperm.xlu0 %1273, %v1374_v4  }
  0xb1   :  { %v1576_v45 = vadd.f32 %v319_v2, %v238_v20 }
  0xb5   :  { %v206_v47 = vpop.permute.xlu1 %205  ;;  %1274 = vset.pattern.permute.xlu1 %v1308_v29  ;;  %v201_v49 = vpop.permute.xlu0 %200 }
  0xb6   :  { %v1581_v50 = vadd.f32 %v206_v47, %v151_v46  ;;  %1275 = vset.pattern.permute.xlu2 %v1308_v29  ;;  %v246_v51 = vadd.f32 %v201_v49, %v150_v35  ;;  %453 = vperm.xlu1 %1274, %v1384_v6   ;;  %v268_v52 = vpop.permute.xlu2 %267  ;;  %v596_v49 = vld [vmem:[%s2203_s4 + $0x18] sm:$0xff] }
  0xb7   :  { %457 = vperm.xlu2 %1275, %v1358_v1   ;;  %v322_v4 = vmul.f32 %v1565_v31, %v268_v52  ;;  %481 = vperm.xlu0 %1273, %v1392_v7  }
  0xb9   :  { %v1587_v54 = vadd.f32 %v322_v4, %v241_v28 }
  0xbd   :  { %v221_v56 = vpop.permute.xlu1 %220  ;;  %v216_v57 = vpop.permute.xlu0 %215 }
  0xbe   :  { %v1592_v59 = vadd.f32 %v221_v56, %v154_v55  ;;  %v249_v61 = vadd.f32 %v216_v57, %v153_v36  ;;  %461 = vperm.xlu1 %1274, %v1379_v5   ;;  %v276_v6 = vpop.permute.xlu2 %275 }
  0xbf   :  { %465 = vperm.xlu2 %1275, %v1353_v0   ;;  %v324_v1 = vmul.f32 %v1565_v31, %v276_v6  ;;  %493 = vperm.xlu0 %1273, %v1410_v10   ;;  %v598_v6 = vld [vmem:[%s2203_s4 + $0x28] sm:$0xff] }
  0xc1   :  { %v1598_v7 = vadd.f32 %v324_v1, %v243_v42 }
  0xc5   :  { %v236_v62 = vpop.permute.xlu1 %235  ;;  %v231_v63 = vpop.permute.xlu0 %230 }
  0xc6   :  { %v1603_v17 = vadd.f32 %v236_v62, %v157_v60  ;;  %v252_v20 = vadd.f32 %v231_v63, %v156_v37  ;;  %473 = vperm.xlu1 %1274, %v1402_v9   ;;  %v288_v5 = vpop.permute.xlu2 %287 }
  0xc7   :  { %477 = vperm.xlu2 %1275, %v1397_v8   ;;  %v327_v0 = vmul.f32 %v1565_v31, %v288_v5  ;;  %505 = vperm.xlu0 %1273, %v1428_v13  }
  0xc9   :  { %v1609_v10 = vadd.f32 %v327_v0, %v246_v51  ;;  %v605_v51 = vld [vmem:[%s2203_s4 + $0x60] sm:$0xff] }
  0xce   :  { %v264_v44 = vpop.permute.xlu1 %263  ;;  %485 = vperm.xlu1 %1274, %v1420_v12   ;;  %v300_v19 = vpop.permute.xlu2 %299 }
  0xcf   :  { %v321_v21 = vmul.f32 %v1565_v31, %v264_v44  ;;  %489 = vperm.xlu2 %1275, %v1415_v11   ;;  %v330_v8 = vmul.f32 %v1565_v31, %v300_v19  ;;  %1277 = vset.pattern.permute.xlu0 %v1305_v3  ;;  %v260_v9 = vpop.permute.xlu0 %259 }
  0xd0   :  { %v320_v13 = vmul.f32 %v1565_v31, %v260_v9  ;;  %632 = vperm.xlu0 %1277, %v594_v41   ;;  %v600_v41 = vld [vmem:[%s2203_s4 + $0x38] sm:$0xff] }
  0xd1   :  { %v1621_v22 = vadd.f32 %v321_v21, %v1561_v30  ;;  %v1623_v23 = vadd.f32 %v330_v8, %v249_v61 }
  0xd2   :  { %v336_v12 = vadd.f32 %v320_v13, %v1530_v48 }
  0xd6   :  { %v272_v11 = vpop.permute.xlu1 %271  ;;  %497 = vperm.xlu1 %1274, %v1438_v15   ;;  %v312_v26 = vpop.permute.xlu2 %311  ;;  %v593_v15 = vld [vmem:[%s2203_s4] sm:$0xff] }
  0xd7   :  { %v323_v27 = vmul.f32 %v1565_v31, %v272_v11  ;;  %501 = vperm.xlu2 %1275, %v1433_v14   ;;  %v333_v28 = vmul.f32 %v1565_v31, %v312_v26  ;;  %v280_v29 = vpop.permute.xlu0 %279  ;;  %v602_v14 = vld [vmem:[%s2203_s4 + $0x48] sm:$0xff]  ;;  %v603_v11 = vld [vmem:[%s2203_s4 + $0x50] sm:$0xff]  ;;  %v604_v26 = vld [vmem:[%s2203_s4 + $0x58] sm:$0xff] }
  0xd8   :  { %v325_v30 = vmul.f32 %v1565_v31, %v280_v29  ;;  %657 = vperm.xlu0 %1277, %v599_v24  }
  0xd9   :  { %v339_v48 = vadd.f32 %v323_v27, %v1536_v53  ;;  %v1635_v32 = vadd.f32 %v333_v28, %v252_v20  ;;  %v614_v27 = vld [vmem:[%s2203_s4 + $0xa8] sm:$0xff] }
  0xda   :  { %v341_v33 = vadd.f32 %v325_v30, %v1571_v39 }
  0xde   :  { %v284_v38 = vpop.permute.xlu1 %283  ;;  %509 = vperm.xlu1 %1274, %v1452_v18   ;;  %v595_v18 = vld [vmem:[%s2203_s4 + $0x10] sm:$0xff] }
  0xdf   :  { %v326_v53 = vmul.f32 %v1565_v31, %v284_v38  ;;  %1276 = vset.pattern.permute.xlu2 %v1305_v3  ;;  %v292_v42 = vpop.permute.xlu0 %291 }
  0xe0   :  { %v328_v39 = vmul.f32 %v1565_v31, %v292_v42  ;;  %627 = vperm.xlu2 %1276, %v593_v15   ;;  %v357_v43 = vpop.permute.xlu2 %356  ;;  %672 = vperm.xlu0 %1277, %v602_v14   ;;  %v607_v15 = vld [vmem:[%s2203_s4 + $0x70] sm:$0xff]  ;;  %v617_v14 = vld [vmem:[%s2203_s4 + $0xc0] sm:$0xff] }
  0xe1   :  { %v342_v2 = vadd.f32 %v326_v53, %v1542_v58  ;;  %v417_v35 = vmul.f32 %v1642_v34, %v357_v43  ;;  %v610_v43 = vld [vmem:[%s2203_s4 + $0x88] sm:$0xff] }
  0xe2   :  { %v344_v46 = vadd.f32 %v328_v39, %v1581_v50  ;;  %v609_v39 = vld [vmem:[%s2203_s4 + $0x80] sm:$0xff] }
  0xe3   :  { %v1654_v47 = vadd.f32 %v417_v35, %v336_v12 }
  0xe6   :  { %v296_v52 = vpop.permute.xlu1 %295  ;;  %1278 = vset.pattern.permute.xlu1 %v1305_v3  ;;  %v597_v3 = vld [vmem:[%s2203_s4 + $0x20] sm:$0xff] }
  0xe7   :  { %v329_v58 = vmul.f32 %v1565_v31, %v296_v52  ;;  %v304_v50 = vpop.permute.xlu0 %303  ;;  %637 = vperm.xlu1 %1278, %v595_v18   ;;  %v613_v52 = vld [vmem:[%s2203_s4 + $0xa0] sm:$0xff] }
  0xe8   :  { %v331_v4 = vmul.f32 %v1565_v31, %v304_v50  ;;  %642 = vperm.xlu2 %1276, %v596_v49   ;;  %v369_v36 = vpop.permute.xlu2 %368  ;;  %687 = vperm.xlu0 %1277, %v605_v51   ;;  %v612_v51 = vld [vmem:[%s2203_s4 + $0x98] sm:$0xff] }
  0xe9   :  { %v1669_v55 = vadd.f32 %v329_v58, %v1549_v16  ;;  %v420_v56 = vmul.f32 %v1642_v34, %v369_v36  ;;  %v608_v16 = vld [vmem:[%s2203_s4 + $0x78] sm:$0xff]  ;;  %v623_v58 = vld [vmem:[%s2203_s4 + $0xf0] sm:$0xff] }
  0xea   :  { %v1673_v57 = vadd.f32 %v331_v4, %v1592_v59  ;;  %v1773_v4 = vperm.slane %v1519_v40, 3  ;;  %v616_v40 = vld [vmem:[%s2203_s4 + $0xb8] sm:$0xff] }
  0xeb   :  { %v1675_v61 = vadd.f32 %v420_v56, %v339_v48 }
  0xee   :  { %v308_v1 = vpop.permute.xlu1 %307 }
  0xef   :  { %v332_v37 = vmul.f32 %v1565_v31, %v308_v1  ;;  %v316_v60 = vpop.permute.xlu0 %315  ;;  %647 = vperm.xlu1 %1278, %v597_v3  }
  0xf0   :  { %v334_v59 = vmul.f32 %v1565_v31, %v316_v60  ;;  %652 = vperm.xlu2 %1276, %v598_v6   ;;  %v377_v62 = vpop.permute.xlu2 %376  ;;  %702 = vperm.xlu0 %1277, %v608_v16   ;;  %v601_v31 = vld [vmem:[%s2203_s4 + $0x40] sm:$0xff]  ;;  %v615_v16 = vld [vmem:[%s2203_s4 + $0xb0] sm:$0xff]  ;;  %v618_v60 = vld [vmem:[%s2203_s4 + $0xc8] sm:$0xff] }
  0xf1   :  { %v1689_v63 = vadd.f32 %v332_v37, %v1557_v25  ;;  %v422_v20 = vmul.f32 %v1642_v34, %v377_v62  ;;  %v611_v25 = vld [vmem:[%s2203_s4 + $0x90] sm:$0xff]  ;;  %v931_v37 = vld [vmem:[%s2204_s5 + $0x8] sm:$0xff]  ;;  %v934_v62 = vld [vmem:[%s2204_s5 + $0x20] sm:$0xff] }
  0xf2   :  { %v1693_v5 = vadd.f32 %v334_v59, %v1603_v17  ;;  %v619_v59 = vld [vmem:[%s2203_s4 + $0xd0] sm:$0xff] }
  0xf3   :  { %v1695_v0 = vadd.f32 %v422_v20, %v341_v33  ;;  %v606_v33 = vld [vmem:[%s2203_s4 + $0x68] sm:$0xff] }
  0xf7   :  { %662 = vperm.xlu1 %1278, %v600_v41   ;;  %v353_v44 = vpop.permute.xlu1 %352 }
  0xf8   :  { %v416_v19 = vmul.f32 %v1642_v34, %v353_v44  ;;  %667 = vperm.xlu2 %1276, %v601_v31   ;;  %v389_v17 = vpop.permute.xlu2 %388  ;;  %717 = vperm.xlu0 %1277, %v611_v25   ;;  %v361_v21 = vpop.permute.xlu0 %360  ;;  %v621_v44 = vld [vmem:[%s2203_s4 + $0xe0] sm:$0xff] }
  0xf9   :  { %v425_v8 = vmul.f32 %v1642_v34, %v389_v17  ;;  %v418_v9 = vmul.f32 %v1642_v34, %v361_v21  ;;  %v937_v17 = vld [vmem:[%s2204_s5 + $0x38] sm:$0xff] }
  0xfa   :  { %v432_v13 = vadd.f32 %v416_v19, %v1576_v45  ;;  %v622_v19 = vld [vmem:[%s2203_s4 + $0xe8] sm:$0xff] }
  0xfb   :  { %v1710_v12 = vadd.f32 %v425_v8, %v344_v46  ;;  %v1713_v24 = vadd.f32 %v418_v9, %v1621_v22  ;;  %v624_v9 = vld [vmem:[%s2203_s4 + $0xf8] sm:$0xff] }
  0xff   :  { %677 = vperm.xlu1 %1278, %v603_v11   ;;  %v365_v28 = vpop.permute.xlu1 %364  ;;  %v940_v11 = vld [vmem:[%s2204_s5 + $0x50] sm:$0xff] }
 0x100   :  { %v419_v45 = vmul.f32 %v1642_v34, %v365_v28  ;;  %682 = vperm.xlu2 %1276, %v604_v26   ;;  %732 = vperm.xlu0 %1277, %v614_v27   ;;  %v381_v22 = vpop.permute.xlu0 %380  ;;  %v1761_v49 = vpop.permute.xlu2 %400 }
 0x101   :  { %v423_v29 = vmul.f32 %v1642_v34, %v381_v22  ;;  %v933_v22 = vld [vmem:[%s2204_s5 + $0x18] sm:$0xff] }
 0x102   :  { %v1727_v30 = vadd.f32 %v419_v45, %v1587_v54  ;;  %v932_v45 = vld [vmem:[%s2204_s5 + $0x10] sm:$0xff] }
 0x103   :  { %v1729_v48 = vadd.f32 %v423_v29, %v342_v2  ;;  %v620_v2 = vld [vmem:[%s2203_s4 + $0xd8] sm:$0xff]  ;;  %v943_v29 = vld [vmem:[%s2204_s5 + $0x68] sm:$0xff] }
 0x107   :  { %692 = vperm.xlu1 %1278, %v606_v33   ;;  %v373_v38 = vpop.permute.xlu1 %372 }
 0x108   :  { %v421_v53 = vmul.f32 %v1642_v34, %v373_v38  ;;  %697 = vperm.xlu2 %1276, %v607_v15   ;;  %747 = vperm.xlu0 %1277, %v617_v14   ;;  %v1741_v54 = vpop.permute.xlu0 %392  ;;  %v413_v1 = vpop.permute.xlu2 %412  ;;  %v935_v14 = vld [vmem:[%s2204_s5 + $0x28] sm:$0xff] }
 0x10a   :  { %v1744_v42 = vadd.f32 %v421_v53, %v1598_v7  ;;  %v936_v53 = vld [vmem:[%s2204_s5 + $0x30] sm:$0xff] }
 0x10f   :  { %707 = vperm.xlu1 %1278, %v609_v39   ;;  %v385_v35 = vpop.permute.xlu1 %384  ;;  %v946_v39 = vld [vmem:[%s2204_s5 + $0x80] sm:$0xff] }
 0x110   :  { %v424_v46 = vmul.f32 %v1642_v34, %v385_v35  ;;  %712 = vperm.xlu2 %1276, %v610_v43   ;;  %762 = vperm.xlu0 %1277, %v620_v2   ;;  %v1756_v7 = vpop.permute.xlu0 %404  ;;  %v938_v2 = vld [vmem:[%s2204_s5 + $0x40] sm:$0xff]  ;;  %v431_v35 = vmul.f32 %v1642_v34, %v413_v1 }
 0x111   :  { %v1800_v20 = vpop.permute.xlu2 %457 }
 0x112   :  { %v1759_v18 = vadd.f32 %v424_v46, %v1609_v10 }
 0x117   :  { %722 = vperm.xlu1 %1278, %v612_v51   ;;  %v397_v50 = vpop.permute.xlu1 %396  ;;  %v939_v51 = vld [vmem:[%s2204_s5 + $0x48] sm:$0xff] }
 0x118   :  { %v427_v10 = vmul.f32 %v1642_v34, %v397_v50  ;;  %727 = vperm.xlu2 %1276, %v613_v52   ;;  %777 = vperm.xlu0 %1277, %v623_v58   ;;  %v949_v52 = vld [vmem:[%s2204_s5 + $0x98] sm:$0xff] }
 0x119   :  { %v450_v36 = vpop.permute.xlu0 %449 }
 0x11a   :  { %v1777_v56 = vadd.f32 %v427_v10, %v1623_v23  ;;  %v513_v3 = vmul.f32 %v1773_v4, %v450_v36  ;;  %v429_v10 = vmul.f32 %v1642_v34, %v1756_v7 }
 0x11c   :  { %v1780_v6 = vadd.f32 %v513_v3, %v432_v13  ;;  %v930_v13 = vld [vmem:[%s2204_s5] sm:$0xff] }
 0x11f   :  { %737 = vperm.xlu1 %1278, %v615_v16   ;;  %v409_v23 = vpop.permute.xlu1 %408  ;;  %v447_v16 = vadd.f32 %v431_v35, %v1693_v5  ;;  %v947_v35 = vld [vmem:[%s2204_s5 + $0x88] sm:$0xff] }
 0x120   :  { %742 = vperm.xlu2 %1276, %v616_v40   ;;  %969 = vperm.xlu0 %1277, %v931_v37   ;;  %v430_v58 = vmul.f32 %v1642_v34, %v409_v23  ;;  %v428_v40 = vmul.f32 %v1642_v34, %v1761_v49 }
 0x121   :  { %v1815_v21 = vpop.permute.xlu0 %469 }
 0x122   :  { %v446_v37 = vadd.f32 %v430_v58, %v1635_v32  ;;  %v952_v32 = vld [vmem:[%s2204_s5 + $0xb0] sm:$0xff]  ;;  %v444_v49 = vadd.f32 %v428_v40, %v1673_v57  ;;  %v515_v58 = vmul.f32 %v1773_v4, %v1800_v20  ;;  %v953_v40 = vld [vmem:[%s2204_s5 + $0xb8] sm:$0xff] }
 0x127   :  { %752 = vperm.xlu1 %1278, %v618_v60  }
 0x128   :  { %757 = vperm.xlu2 %1276, %v619_v59   ;;  %984 = vperm.xlu0 %1277, %v934_v62   ;;  %v454_v41 = vpop.permute.xlu1 %453  ;;  %v445_v59 = vadd.f32 %v429_v10, %v1689_v63  ;;  %v426_v63 = vmul.f32 %v1642_v34, %v1741_v54 }
 0x129   :  { %v514_v31 = vmul.f32 %v1773_v4, %v454_v41  ;;  %v1832_v27 = vpop.permute.xlu0 %481  ;;  %v941_v41 = vld [vmem:[%s2204_s5 + $0x58] sm:$0xff] }
 0x12a   :  { %v442_v57 = vadd.f32 %v426_v63, %v1669_v55  ;;  %v945_v55 = vld [vmem:[%s2204_s5 + $0x78] sm:$0xff]  ;;  %v960_v63 = vld [vmem:[%s2204_s5 + $0xf0] sm:$0xff] }
 0x12b   :  { %v1804_v25 = vadd.f32 %v514_v31, %v1654_v47  ;;  %v1819_v47 = vpop.permute.xlu2 %465  ;;  %v942_v31 = vld [vmem:[%s2204_s5 + $0x60] sm:$0xff] }
 0x12f   :  { %767 = vperm.xlu1 %1278, %v621_v44  }
 0x130   :  { %772 = vperm.xlu2 %1276, %v622_v19   ;;  %999 = vperm.xlu0 %1277, %v937_v17   ;;  %v1817_v8 = vpop.permute.xlu1 %461 }
 0x131   :  { %v494_v15 = vpop.permute.xlu0 %493 }
 0x132   :  { %v524_v19 = vmul.f32 %v1773_v4, %v494_v15  ;;  %v521_v15 = vmul.f32 %v1773_v4, %v1832_v27 }
 0x133   :  { %v1834_v28 = vpop.permute.xlu2 %477 }
 0x134   :  { %v520_v27 = vmul.f32 %v1773_v4, %v1834_v28  ;;  %v518_v28 = vmul.f32 %v1773_v4, %v1815_v21  ;;  %v958_v21 = vld [vmem:[%s2204_s5 + $0xe0] sm:$0xff] }
 0x137   :  { %782 = vperm.xlu1 %1278, %v624_v9  }
 0x138   :  { %964 = vperm.xlu2 %1276, %v930_v13   ;;  %1014 = vperm.xlu0 %1277, %v940_v11   ;;  %v1830_v26 = vpop.permute.xlu1 %473 }
 0x139   :  { %v506_v46 = vpop.permute.xlu0 %505 }
 0x13a   :  { %v527_v36 = vmul.f32 %v1773_v4, %v506_v46 }
 0x13b   :  { %v490_v38 = vpop.permute.xlu2 %489 }
 0x13c   :  { %v543_v7 = vadd.f32 %v527_v36, %v446_v37  ;;  %v523_v13 = vmul.f32 %v1773_v4, %v490_v38  ;;  %v954_v37 = vld [vmem:[%s2204_s5 + $0xc0] sm:$0xff] }
 0x13e   :  { %v559_v17 = vmax.f32 %v543_v7, 0.0  ;;  %v586_v7 = vld [vmem:[%s2202_s3 + $0xc8] sm:$0xff] }
 0x13f   :  { %974 = vperm.xlu1 %1278, %v932_v45   ;;  %v540_v45 = vadd.f32 %v524_v19, %v1777_v56  ;;  %v955_v56 = vld [vmem:[%s2204_s5 + $0xc8] sm:$0xff] }
 0x140   :  { %979 = vperm.xlu2 %1276, %v933_v22   ;;  %1029 = vperm.xlu0 %1277, %v943_v29   ;;  %v486_v33 = vpop.permute.xlu1 %485  ;;  %v944_v22 = vld [vmem:[%s2204_s5 + $0x70] sm:$0xff]  ;;  %v539_v29 = vadd.f32 %v523_v13, %v442_v57  ;;  %v580_v13 = vld [vmem:[%s2202_s3 + $0x98] sm:$0xff] }
 0x141   :  { %v522_v34 = vmul.f32 %v1773_v4, %v486_v33  ;;  %v556_v33 = vmax.f32 %v540_v45, 0.0  ;;  %v565_v45 = vld [vmem:[%s2202_s3 + $0x20] sm:$0xff] }
 0x142   :  { %v555_v38 = vmax.f32 %v539_v29, 0.0  ;;  %v589_v29 = vld [vmem:[%s2202_s3 + $0xe0] sm:$0xff] }
 0x143   :  { %v502_v50 = vpop.permute.xlu2 %501 }
 0x144   :  { %v526_v23 = vmul.f32 %v1773_v4, %v502_v50 }
 0x146   :  { %v542_v44 = vadd.f32 %v526_v23, %v445_v59  ;;  %v562_v23 = vld [vmem:[%s2202_s3 + $0x8] sm:$0xff] }
 0x147   :  { %989 = vperm.xlu1 %1278, %v935_v14   ;;  %v538_v14 = vadd.f32 %v522_v34, %v1710_v12  ;;  %v536_v12 = vadd.f32 %v520_v27, %v1729_v48  ;;  %v948_v48 = vld [vmem:[%s2204_s5 + $0x90] sm:$0xff]  ;;  %v578_v59 = vld [vmem:[%s2202_s3 + $0x88] sm:$0xff]  ;;  %v573_v34 = vld [vmem:[%s2202_s3 + $0x60] sm:$0xff] }
 0x148   :  { %994 = vperm.xlu2 %1276, %v936_v53   ;;  %1044 = vperm.xlu0 %1277, %v946_v39   ;;  %v498_v43 = vpop.permute.xlu1 %497  ;;  %v558_v11 = vmax.f32 %v542_v44, 0.0  ;;  %v537_v53 = vadd.f32 %v521_v15, %v1759_v18  ;;  %v519_v39 = vmul.f32 %v1773_v4, %v1830_v26  ;;  %v517_v18 = vmul.f32 %v1773_v4, %v1819_v47  ;;  %v959_v44 = vld [vmem:[%s2204_s5 + $0xe8] sm:$0xff]  ;;  %v2028_v15 = vpop.permute.xlu0 %632 }
 0x149   :  { %v525_v62 = vmul.f32 %v1773_v4, %v498_v43  ;;  %v554_v43 = vmax.f32 %v538_v14, 0.0  ;;  %v552_v46 = vmax.f32 %v536_v12, 0.0  ;;  %v534_v47 = vadd.f32 %v518_v28, %v1744_v42  ;;  %v590_v14 = vld [vmem:[%s2202_s3 + $0xe8] sm:$0xff]  ;;  %v583_v12 = vld [vmem:[%s2202_s3 + $0xb0] sm:$0xff] }
 0x14a   :  { %v535_v26 = vadd.f32 %v519_v39, %v1695_v0  ;;  %v533_v0 = vadd.f32 %v517_v18, %v1675_v61  ;;  %v950_v61 = vld [vmem:[%s2204_s5 + $0xa0] sm:$0xff]  ;;  %v567_v39 = vld [vmem:[%s2202_s3 + $0x30] sm:$0xff] }
 0x14b   :  { %v541_v9 = vadd.f32 %v525_v62, %v444_v49  ;;  %v550_v50 = vmax.f32 %v534_v47, 0.0  ;;  %v956_v62 = vld [vmem:[%s2204_s5 + $0xd0] sm:$0xff]  ;;  %v1998_v19 = vpop.permute.xlu2 %627 }
 0x14c   :  { %v549_v42 = vmax.f32 %v533_v0, 0.0  ;;  %v587_v49 = vld [vmem:[%s2202_s3 + $0xd0] sm:$0xff] }
 0x14d   :  { %v557_v54 = vmax.f32 %v541_v9, 0.0  ;;  %v572_v9 = vld [vmem:[%s2202_s3 + $0x58] sm:$0xff]  ;;  %v591_v28 = vld [vmem:[%s2202_s3 + $0xf0] sm:$0xff] }
 0x14f   :  { %1004 = vperm.xlu1 %1278, %v938_v2   ;;  %v553_v2 = vmax.f32 %v537_v53, 0.0 }
 0x150   :  { %1009 = vperm.xlu2 %1276, %v939_v51   ;;  %1059 = vperm.xlu0 %1277, %v949_v52   ;;  %v510_v3 = vpop.permute.xlu1 %509  ;;  %v516_v51 = vmul.f32 %v1773_v4, %v1817_v8  ;;  %v551_v52 = vmax.f32 %v535_v26, 0.0  ;;  %v531_v8 = vadd.f32 %v515_v58, %v1713_v24  ;;  %v546_v24 = vmax.f32 %v1804_v25, 0.0  ;;  %v577_v25 = vld [vmem:[%s2202_s3 + $0x80] sm:$0xff]  ;;  %v2046_v53 = vpop.permute.xlu0 %657 }
 0x151   :  { %v528_v1 = vmul.f32 %v1773_v4, %v510_v3  ;;  %v951_v4 = vld [vmem:[%s2204_s5 + $0xa8] sm:$0xff]  ;;  %v545_v3 = vmax.f32 %v1780_v6, 0.0  ;;  %v585_v6 = vld [vmem:[%s2202_s3 + $0xc0] sm:$0xff] }
 0x152   :  { %v532_v10 = vadd.f32 %v516_v51, %v1727_v30  ;;  %v961_v30 = vld [vmem:[%s2204_s5 + $0xf8] sm:$0xff]  ;;  %v547_v36 = vmax.f32 %v531_v8, 0.0 }
 0x153   :  { %v544_v60 = vadd.f32 %v528_v1, %v447_v16  ;;  %v561_v16 = vld [vmem:[%s2202_s3] sm:$0xff] }
 0x154   :  { %v548_v20 = vmax.f32 %v532_v10, 0.0  ;;  %v569_v1 = vld [vmem:[%s2202_s3 + $0x40] sm:$0xff] }
 0x155   :  { %v560_v5 = vmax.f32 %v544_v60, 0.0  ;;  %v570_v60 = vld [vmem:[%s2202_s3 + $0x48] sm:$0xff] }
 0x157   :  { %1019 = vperm.xlu1 %1278, %v941_v41   ;;  %785 = vmatpush.msra.mxu0 %v560_v5  ;;  %v957_v41 = vld [vmem:[%s2204_s5 + $0xd8] sm:$0xff] }
 0x158   :  { %1024 = vperm.xlu2 %1276, %v942_v31   ;;  %1074 = vperm.xlu0 %1277, %v952_v32   ;;  %v571_v31 = vld [vmem:[%s2202_s3 + $0x50] sm:$0xff]  ;;  %v2064_v26 = vpop.permute.xlu0 %672 }
 0x159   :  { %1211 = vmatpush.msra.mxu1 %v560_v5  ;;  %1212 = vmatpush.msra.mxu2 %v560_v5  ;;  %v579_v32 = vld [vmem:[%s2202_s3 + $0x90] sm:$0xff]  ;;  %v2012_v57 = vpop.permute.xlu1 %637 }
 0x15a   :  { %1213 = vmatpush.msra.mxu3 %v560_v5  ;;  %786 = vmatpush.msra.mxu0 %v559_v17  ;;  %v563_v5 = vld [vmem:[%s2202_s3 + $0x10] sm:$0xff] }
 0x15b   :  { %1214 = vmatpush.msra.mxu1 %v559_v17  ;;  %1215 = vmatpush.msra.mxu2 %v559_v17 }
 0x15c   :  { %1216 = vmatpush.msra.mxu3 %v559_v17  ;;  %787 = vmatpush.msra.mxu0 %v558_v11  ;;  %v564_v17 = vld [vmem:[%s2202_s3 + $0x18] sm:$0xff] }
 0x15d   :  { %1217 = vmatpush.msra.mxu1 %v558_v11  ;;  %1218 = vmatpush.msra.mxu2 %v558_v11 }
 0x15e   :  { %1219 = vmatpush.msra.mxu3 %v558_v11  ;;  %788 = vmatpush.msra.mxu0 %v557_v54  ;;  %v588_v11 = vld [vmem:[%s2202_s3 + $0xd8] sm:$0xff] }
 0x15f   :  { %1220 = vmatpush.msra.mxu1 %v557_v54  ;;  %1221 = vmatpush.msra.mxu2 %v557_v54 }
 0x160   :  { %1222 = vmatpush.msra.mxu3 %v557_v54  ;;  %1034 = vperm.xlu1 %1278, %v944_v22   ;;  %v2020_v54 = vpop.permute.xlu2 %642  ;;  %v581_v22 = vld [vmem:[%s2202_s3 + $0xa0] sm:$0xff]  ;;  %v2082_v51 = vpop.permute.xlu0 %687 }
 0x161   :  { %1039 = vperm.xlu2 %1276, %v945_v55   ;;  %1089 = vperm.xlu0 %1277, %v955_v56   ;;  %v566_v55 = vld [vmem:[%s2202_s3 + $0x28] sm:$0xff]  ;;  %v2042_v27 = vpop.permute.xlu1 %647 }
 0x162   :  { %789 = vmatpush.msra.mxu0 %v556_v33  ;;  %1223 = vmatpush.msra.mxu1 %v556_v33  ;;  %v574_v56 = vld [vmem:[%s2202_s3 + $0x68] sm:$0xff] }
 0x163   :  { %1224 = vmatpush.msra.mxu2 %v556_v33  ;;  %1225 = vmatpush.msra.mxu3 %v556_v33  ;;  %v582_v33 = vld [vmem:[%s2202_s3 + $0xa8] sm:$0xff] }
 0x164   :  { %790 = vmatpush.msra.mxu0 %v555_v38  ;;  %1226 = vmatpush.msra.mxu1 %v555_v38 }
 0x165   :  { %1227 = vmatpush.msra.mxu2 %v555_v38  ;;  %1228 = vmatpush.msra.mxu3 %v555_v38 }
 0x166   :  { %791 = vmatpush.msra.mxu0 %v554_v43  ;;  %1229 = vmatpush.msra.mxu1 %v554_v43 }
 0x167   :  { %1230 = vmatpush.msra.mxu2 %v554_v43  ;;  %1231 = vmatpush.msra.mxu3 %v554_v43  ;;  %v575_v43 = vld [vmem:[%s2202_s3 + $0x70] sm:$0xff] }
 0x168   :  { %792 = vmatpush.msra.mxu0 %v553_v2  ;;  %1232 = vmatpush.msra.mxu1 %v553_v2  ;;  %v2044_v38 = vpop.permute.xlu2 %652 }
 0x169   :  { %1233 = vmatpush.msra.mxu2 %v553_v2  ;;  %1234 = vmatpush.msra.mxu3 %v553_v2  ;;  %v2060_v2 = vpop.permute.xlu1 %662 }
 0x16a   :  { %1049 = vperm.xlu1 %1278, %v947_v35   ;;  %1054 = vperm.xlu2 %1276, %v948_v48   ;;  %v568_v35 = vld [vmem:[%s2202_s3 + $0x38] sm:$0xff] }
 0x16b   :  { %1104 = vperm.xlu0 %1277, %v958_v21   ;;  %793 = vmatpush.msra.mxu0 %v552_v46  ;;  %v576_v48 = vld [vmem:[%s2202_s3 + $0x78] sm:$0xff] }
 0x16c   :  { %1235 = vmatpush.msra.mxu1 %v552_v46  ;;  %1236 = vmatpush.msra.mxu2 %v552_v46  ;;  %v584_v21 = vld [vmem:[%s2202_s3 + $0xb8] sm:$0xff] }
 0x16d   :  { %1237 = vmatpush.msra.mxu3 %v552_v46  ;;  %794 = vmatpush.msra.mxu0 %v551_v52  ;;  %v592_v46 = vld [vmem:[%s2202_s3 + $0xf8] sm:$0xff] }
 0x16e   :  { %1238 = vmatpush.msra.mxu1 %v551_v52  ;;  %1239 = vmatpush.msra.mxu2 %v551_v52 }
 0x16f   :  { %1240 = vmatpush.msra.mxu3 %v551_v52  ;;  %795 = vmatpush.msra.mxu0 %v550_v50 }
 0x170   :  { %1241 = vmatpush.msra.mxu1 %v550_v50  ;;  %1242 = vmatpush.msra.mxu2 %v550_v50  ;;  %v2062_v18 = vpop.permute.xlu2 %667 }
 0x171   :  { %1243 = vmatpush.msra.mxu3 %v550_v50  ;;  %796 = vmatpush.msra.mxu0 %v549_v42  ;;  %v2078_v47 = vpop.permute.xlu1 %677  ;;  %v2088_v50 = vpop.permute.xlu0 %702 }
 0x172   :  { %1244 = vmatpush.msra.mxu1 %v549_v42  ;;  %1245 = vmatpush.msra.mxu2 %v549_v42 }
 0x173   :  { %1246 = vmatpush.msra.mxu3 %v549_v42  ;;  %1064 = vperm.xlu1 %1278, %v950_v61  }
 0x174   :  { %1069 = vperm.xlu2 %1276, %v951_v4   ;;  %1119 = vperm.xlu0 %1277, %v961_v30  }
 0x175   :  { %797 = vmatpush.msra.mxu0 %v548_v20  ;;  %1247 = vmatpush.msra.mxu1 %v548_v20 }
 0x176   :  { %1248 = vmatpush.msra.mxu2 %v548_v20  ;;  %1249 = vmatpush.msra.mxu3 %v548_v20 }
 0x177   :  { %798 = vmatpush.msra.mxu0 %v547_v36  ;;  %1250 = vmatpush.msra.mxu1 %v547_v36 }
 0x178   :  { %1251 = vmatpush.msra.mxu2 %v547_v36  ;;  %1252 = vmatpush.msra.mxu3 %v547_v36  ;;  %v2080_v0 = vpop.permute.xlu2 %682 }
 0x179   :  { %799 = vmatpush.msra.mxu0 %v546_v24  ;;  %1253 = vmatpush.msra.mxu1 %v546_v24  ;;  %v2084_v52 = vpop.permute.xlu1 %692  ;;  %v2094_v61 = vpop.permute.xlu0 %717 }
 0x17a   :  { %1254 = vmatpush.msra.mxu2 %v546_v24  ;;  %1255 = vmatpush.msra.mxu3 %v546_v24 }
 0x17b   :  { %800 = vmatpush.msra.mxu0 %v545_v3  ;;  %1256 = vmatpush.msra.mxu1 %v545_v3 }
 0x17c   :  { %1257 = vmatpush.msra.mxu2 %v545_v3  ;;  %1258 = vmatpush.msra.mxu3 %v545_v3 }
 0x17d   :  { %801 = vmatmul.f32.vlgmr.msra.gmra.mxu0 %v561_v16  ;;  %825 = vmatmul.f32.vlgmr.msra.gmra.mxu1 %v569_v1 }
 0x17e   :  { %849 = vmatmul.f32.vlgmr.msra.gmra.mxu2 %v577_v25  ;;  %873 = vmatmul.f32.vlgmr.msra.gmra.mxu3 %v585_v6 }
 0x17f   :  { %1079 = vperm.xlu1 %1278, %v953_v40   ;;  %1084 = vperm.xlu2 %1276, %v954_v37  }
 0x180   :  { %v2086_v58 = vpop.permute.xlu2 %697 }
 0x181   :  { %v2090_v42 = vpop.permute.xlu1 %707  ;;  %v2100_v30 = vpop.permute.xlu0 %732 }
 0x185   :  { %804 = vmatmul.f32.gmra.mxu0 %v562_v23  ;;  %828 = vmatmul.f32.gmra.mxu1 %v570_v60 }
 0x186   :  { %852 = vmatmul.f32.gmra.mxu2 %v578_v59  ;;  %876 = vmatmul.f32.gmra.mxu3 %v586_v7 }
 0x187   :  { %1094 = vperm.xlu1 %1278, %v956_v62   ;;  %1099 = vperm.xlu2 %1276, %v957_v41  }
 0x188   :  { %v2092_v10 = vpop.permute.xlu2 %712 }
 0x189   :  { %v2096_v8 = vpop.permute.xlu1 %722  ;;  %v2106_v24 = vpop.permute.xlu0 %747 }
 0x18a   :  { %2208 = vst [vmem:[#allocation7_spill] sm:$0xff] %v2106_v24 }
 0x18d   :  { %807 = vmatmul.f32.gmra.mxu0 %v563_v5  ;;  %831 = vmatmul.f32.gmra.mxu1 %v571_v31 }
 0x18e   :  { %855 = vmatmul.f32.gmra.mxu2 %v579_v32  ;;  %879 = vmatmul.f32.gmra.mxu3 %v587_v49 }
 0x18f   :  { %1109 = vperm.xlu1 %1278, %v959_v44   ;;  %1114 = vperm.xlu2 %1276, %v960_v63  }
 0x190   :  { %v2098_v4 = vpop.permute.xlu2 %727 }
 0x191   :  { %v2102_v20 = vpop.permute.xlu1 %737  ;;  %v2112_v1 = vpop.permute.xlu0 %762 }
 0x192   :  { %2211 = vst [vmem:[#allocation10_spill] sm:$0xff] %v2112_v1 }
 0x195   :  { %810 = vmatmul.f32.gmra.mxu0 %v564_v17  ;;  %834 = vmatmul.f32.gmra.mxu1 %v572_v9 }
 0x196   :  { %858 = vmatmul.f32.gmra.mxu2 %v580_v13  ;;  %882 = vmatmul.f32.gmra.mxu3 %v588_v11 }
 0x198   :  { %v2104_v36 = vpop.permute.xlu2 %742 }
 0x199   :  { %2207 = vst [vmem:[#allocation6_spill] sm:$0xff] %v2104_v36  ;;  %v2108_v3 = vpop.permute.xlu1 %752  ;;  %v2118_v40 = vpop.permute.xlu0 %777 }
 0x19a   :  { %2209 = vst [vmem:[#allocation8_spill] sm:$0xff] %v2108_v3 }
 0x19b   :  { %2214 = vst [vmem:[#allocation13_spill] sm:$0xff] %v2118_v40 }
 0x19d   :  { %813 = vmatmul.f32.gmra.mxu0 %v565_v45  ;;  %837 = vmatmul.f32.gmra.mxu1 %v573_v34 }
 0x19e   :  { %861 = vmatmul.f32.gmra.mxu2 %v581_v22  ;;  %885 = vmatmul.f32.gmra.mxu3 %v589_v29 }
 0x1a0   :  { %v2110_v16 = vpop.permute.xlu2 %757 }
 0x1a1   :  { %2210 = vst [vmem:[#allocation9_spill] sm:$0xff] %v2110_v16  ;;  %v2114_v25 = vpop.permute.xlu1 %767  ;;  %v970_v7 = vpop.permute.xlu0 %969 }
 0x1a2   :  { %2212 = vst [vmem:[#allocation11_spill] sm:$0xff] %v2114_v25 }
 0x1a5   :  { %816 = vmatmul.f32.gmra.mxu0 %v566_v55  ;;  %840 = vmatmul.f32.gmra.mxu1 %v574_v56 }
 0x1a6   :  { %864 = vmatmul.f32.gmra.mxu2 %v582_v33  ;;  %888 = vmatmul.f32.gmra.mxu3 %v590_v14 }
 0x1a8   :  { %v2116_v6 = vpop.permute.xlu2 %772 }
 0x1a9   :  { %2213 = vst [vmem:[#allocation12_spill] sm:$0xff] %v2116_v6  ;;  %v2120_v60 = vpop.permute.xlu1 %782  ;;  %v985_v44 = vpop.permute.xlu0 %984 }
 0x1aa   :  { %2215 = vst [vmem:[#allocation14_spill] sm:$0xff] %v2120_v60 }
 0x1ad   :  { %819 = vmatmul.f32.gmra.mxu0 %v567_v39  ;;  %843 = vmatmul.f32.gmra.mxu1 %v575_v43 }
 0x1ae   :  { %867 = vmatmul.f32.gmra.mxu2 %v583_v12  ;;  %891 = vmatmul.f32.gmra.mxu3 %v591_v28 }
 0x1b0   :  { %v965_v59 = vpop.permute.xlu2 %964 }
 0x1b1   :  { %v975_v31 = vpop.permute.xlu1 %974  ;;  %v1000_v34 = vpop.permute.xlu0 %999 }
 0x1b5   :  { %822 = vmatmul.f32.gmra.mxu0 %v568_v35  ;;  %846 = vmatmul.f32.gmra.mxu1 %v576_v48 }
 0x1b6   :  { %870 = vmatmul.f32.gmra.mxu2 %v584_v21  ;;  %894 = vmatmul.f32.gmra.mxu3 %v592_v46 }
 0x1b8   :  { %v980_v32 = vpop.permute.xlu2 %979 }
 0x1b9   :  { %v990_v9 = vpop.permute.xlu1 %989  ;;  %v2130_v39 = vpop.permute.xlu0 %1014 }
 0x1c0   :  { %v995_v11 = vpop.permute.xlu2 %994 }
 0x1c1   :  { %v1005_v56 = vpop.permute.xlu1 %1004  ;;  %v2143_v3 = vpop.permute.xlu0 %1029 }
 0x1c8   :  { %v1010_v33 = vpop.permute.xlu2 %1009 }
 0x1c9   :  { %v1020_v40 = vpop.permute.xlu1 %1019 }
 0x1d0   :  { %v2140_v6 = vpop.permute.xlu2 %1024 }
 0x1fa   :  { %v802_v37 = vpop.f32.mrf.mxu0  ;;  %v826_v23 = vpop.f32.mrf.mxu1 }
 0x1fb   :  { %v803_v35 = vadd.f32 %v802_v37, %v1998_v19 }
 0x1fd   :  { %v898_v25 = vmax.f32 %v803_v35, 0.0 }
 0x201   :  { %v2122_v5 = vpop.f32.mrf.mxu2  ;;  %v2126_v22 = vpop.f32.mrf.mxu3 }
 0x202   :  { %v805_v62 = vpop.f32.mrf.mxu0  ;;  %v829_v41 = vpop.f32.mrf.mxu1  ;;  %2216 = vst [vmem:[#allocation15_spill] sm:$0xff] %v2126_v22 }
 0x203   :  { %v806_v12 = vadd.f32 %v805_v62, %v2028_v15 }
 0x205   :  { %v899_v46 = vmax.f32 %v806_v12, 0.0 }
 0x207   :  { %v1123_v15 = vmul.f32 %v970_v7, %v899_v46  ;;  %v1035_v7 = vpop.permute.xlu1 %1034 }
 0x209   :  { %v2124_v17 = vpop.f32.mrf.mxu2  ;;  %v2132_v43 = vpop.f32.mrf.mxu3 }
 0x20a   :  { %v808_v49 = vpop.f32.mrf.mxu0  ;;  %v832_v63 = vpop.f32.mrf.mxu1  ;;  %2217 = vst [vmem:[#allocation16_spill] sm:$0xff] %v2132_v43 }
 0x20b   :  { %v809_v48 = vadd.f32 %v808_v49, %v2012_v57  ;;  %v1122_v49 = vmul.f32 %v965_v59, %v898_v25 }
 0x20d   :  { %v900_v1 = vmax.f32 %v809_v48, 0.0  ;;  %v1154_v22 = vadd.f32 %v1123_v15, %v1122_v49 }
 0x20f   :  { %v1124_v12 = vmul.f32 %v975_v31, %v900_v1  ;;  %v1045_v31 = vpop.permute.xlu0 %1044 }
 0x211   :  { %v2128_v29 = vpop.f32.mrf.mxu2  ;;  %v2146_v57 = vpop.f32.mrf.mxu3 }
 0x212   :  { %v811_v13 = vpop.f32.mrf.mxu0  ;;  %v835_v45 = vpop.f32.mrf.mxu1  ;;  %2218 = vst [vmem:[#allocation17_spill] sm:$0xff] %v2146_v57 }
 0x213   :  { %v812_v60 = vadd.f32 %v811_v13, %v2020_v54 }
 0x215   :  { %v901_v62 = vmax.f32 %v812_v60, 0.0  ;;  %v1040_v60 = vpop.permute.xlu2 %1039 }
 0x217   :  { %v1125_v35 = vmul.f32 %v980_v32, %v901_v62 }
 0x219   :  { %v2137_v21 = vpop.f32.mrf.mxu2  ;;  %v2154_v32 = vpop.f32.mrf.mxu3 }
 0x21a   :  { %v814_v55 = vpop.f32.mrf.mxu0  ;;  %v838_v14 = vpop.f32.mrf.mxu1 }
 0x21b   :  { %v815_v16 = vadd.f32 %v814_v55, %v2042_v27  ;;  %v1155_v27 = vadd.f32 %v1154_v22, %v1124_v12 }
 0x21d   :  { %v902_v54 = vmax.f32 %v815_v16, 0.0  ;;  %v830_v16 = vadd.f32 %v829_v41, %v2064_v26 }
 0x21f   :  { %v1126_v55 = vmul.f32 %v985_v44, %v902_v54  ;;  %v833_v44 = vadd.f32 %v832_v63, %v2078_v47  ;;  %v1055_v47 = vpop.permute.xlu2 %1054 }
 0x221   :  { %v2149_v24 = vpop.f32.mrf.mxu2  ;;  %v908_v26 = vmax.f32 %v833_v44, 0.0 }
 0x222   :  { %v817_v28 = vpop.f32.mrf.mxu0  ;;  %v841_v43 = vpop.f32.mrf.mxu1  ;;  %v863_v44 = vadd.f32 %v2149_v24, %v2098_v4  ;;  %v2220_v4 = vld [vmem:[#allocation7_spill] sm:$0xff] }
 0x223   :  { %v818_v19 = vadd.f32 %v817_v28, %v2044_v38  ;;  %v827_v38 = vadd.f32 %v826_v23, %v2062_v18  ;;  %v1156_v28 = vadd.f32 %v1155_v27, %v1125_v35  ;;  %v836_v18 = vadd.f32 %v835_v45, %v2080_v0  ;;  %v2221_v24 = vld [vmem:[#allocation15_spill] sm:$0xff] }
 0x224   :  { %v842_v54 = vadd.f32 %v841_v43, %v2084_v52  ;;  %v1132_v35 = vmul.f32 %v2130_v39, %v908_v26  ;;  %v851_v52 = vadd.f32 %v2122_v5, %v2090_v42  ;;  %v2219_v26 = vld [vmem:[#allocation6_spill] sm:$0xff] }
 0x225   :  { %v903_v48 = vmax.f32 %v818_v19, 0.0  ;;  %v1157_v1 = vadd.f32 %v1156_v28, %v1126_v55  ;;  %v906_v22 = vmax.f32 %v827_v38, 0.0  ;;  %v907_v19 = vmax.f32 %v830_v16, 0.0 }
 0x226   :  { %v909_v12 = vmax.f32 %v836_v18, 0.0 }
 0x227   :  { %v1127_v46 = vmul.f32 %v990_v9, %v903_v48  ;;  %v1130_v49 = vmul.f32 %v1005_v56, %v906_v22  ;;  %v2162_v56 = vpop.f32.mrf.mxu3  ;;  %v1070_v42 = vpop.permute.xlu2 %1069 }
 0x228   :  { %v1133_v27 = vmul.f32 %v1020_v40, %v909_v12 }
 0x229   :  { %v1158_v15 = vadd.f32 %v1157_v1, %v1127_v46 }
 0x22a   :  { %v820_v37 = vpop.f32.mrf.mxu0  ;;  %v844_v57 = vpop.f32.mrf.mxu1 }
 0x22b   :  { %v821_v13 = vadd.f32 %v820_v37, %v2046_v53  ;;  %v865_v37 = vpop.f32.mrf.mxu2  ;;  %v845_v0 = vadd.f32 %v844_v57, %v2086_v58  ;;  %v854_v58 = vadd.f32 %v2124_v17, %v2092_v10 }
 0x22d   :  { %v904_v36 = vmax.f32 %v821_v13, 0.0  ;;  %v912_v55 = vmax.f32 %v845_v0, 0.0  ;;  %v915_v5 = vmax.f32 %v854_v58, 0.0 }
 0x22f   :  { %v1128_v53 = vmul.f32 %v995_v11, %v904_v36  ;;  %v839_v36 = vadd.f32 %v838_v14, %v2082_v51  ;;  %v1131_v11 = vmul.f32 %v1010_v33, %v907_v19  ;;  %v911_v51 = vmax.f32 %v842_v54, 0.0  ;;  %v889_v10 = vpop.f32.mrf.mxu3 }
 0x230   :  { %v1136_v16 = vmul.f32 %v1035_v7, %v912_v55 }
 0x231   :  { %v1159_v23 = vadd.f32 %v1158_v15, %v1128_v53  ;;  %v910_v48 = vmax.f32 %v839_v36, 0.0  ;;  %v1135_v57 = vmul.f32 %v2143_v3, %v911_v51 }
 0x232   :  { %v823_v25 = vpop.f32.mrf.mxu0  ;;  %v847_v63 = vpop.f32.mrf.mxu1 }
 0x233   :  { %v824_v59 = vadd.f32 %v823_v25, %v2060_v2  ;;  %v1050_v2 = vpop.permute.xlu1 %1049  ;;  %v848_v33 = vadd.f32 %v847_v63, %v2088_v50  ;;  %v1134_v43 = vmul.f32 %v2140_v6, %v910_v48  ;;  %v868_v39 = vpop.f32.mrf.mxu2  ;;  %v914_v25 = vmax.f32 %v851_v52, 0.0  ;;  %v2226_v52 = vld [vmem:[#allocation10_spill] sm:$0xff] }
 0x234   :  { %v857_v50 = vadd.f32 %v2128_v29, %v2094_v61  ;;  %v860_v6 = vadd.f32 %v2137_v21, %v2096_v8  ;;  %v866_v61 = vadd.f32 %v865_v37, %v2100_v30  ;;  %v869_v8 = vadd.f32 %v868_v39, %v2102_v20 }
 0x235   :  { %v905_v62 = vmax.f32 %v824_v59, 0.0  ;;  %v913_v28 = vmax.f32 %v848_v33, 0.0  ;;  %v1138_v17 = vmul.f32 %v1045_v31, %v914_v25 }
 0x236   :  { %v916_v3 = vmax.f32 %v857_v50, 0.0  ;;  %v917_v19 = vmax.f32 %v860_v6, 0.0  ;;  %v920_v12 = vmax.f32 %v869_v8, 0.0 }
 0x237   :  { %v1129_v9 = vmul.f32 %v1000_v34, %v905_v62  ;;  %v1060_v34 = vpop.permute.xlu0 %1059  ;;  %v1137_v53 = vmul.f32 %v1040_v60, %v913_v28  ;;  %v1139_v62 = vmul.f32 %v1050_v2, %v915_v5  ;;  %v875_v2 = vadd.f32 %v2221_v24, %v2220_v4  ;;  %v892_v54 = vpop.f32.mrf.mxu3  ;;  %v2227_v28 = vld [vmem:[#allocation11_spill] sm:$0xff] }
 0x238   :  { %v1140_v18 = vmul.f32 %v1055_v47, %v916_v3  ;;  %v2223_v47 = vld [vmem:[#allocation16_spill] sm:$0xff] }
 0x239   :  { %v1160_v41 = vadd.f32 %v1159_v23, %v1129_v9  ;;  %v918_v23 = vmax.f32 %v863_v44, 0.0  ;;  %v1141_v9 = vmul.f32 %v1060_v34, %v917_v19  ;;  %v922_v0 = vmax.f32 %v875_v2, 0.0  ;;  %v2225_v34 = vld [vmem:[#allocation17_spill] sm:$0xff]  ;;  %v2230_v19 = vld [vmem:[#allocation14_spill] sm:$0xff] }
 0x23b   :  { %v1161_v13 = vadd.f32 %v1160_v41, %v1130_v49  ;;  %v1065_v40 = vpop.permute.xlu1 %1064  ;;  %v871_v7 = vpop.f32.mrf.mxu2  ;;  %v919_v49 = vmax.f32 %v866_v61, 0.0 }
 0x23c   :  { %v872_v36 = vadd.f32 %v871_v7, %v2219_v26  ;;  %v1085_v41 = vpop.permute.xlu2 %1084 }
 0x23d   :  { %v1162_v45 = vadd.f32 %v1161_v13, %v1131_v11  ;;  %v1142_v11 = vmul.f32 %v1065_v40, %v918_v23  ;;  %v2222_v13 = vld [vmem:[#allocation8_spill] sm:$0xff]  ;;  %v1143_v20 = vmul.f32 %v1070_v42, %v919_v49  ;;  %v1146_v58 = vmul.f32 %v1085_v41, %v922_v0 }
 0x23e   :  { %v878_v63 = vadd.f32 %v2223_v47, %v2222_v13 }
 0x23f   :  { %v1163_v14 = vadd.f32 %v1162_v45, %v1132_v35  ;;  %v1075_v22 = vpop.permute.xlu0 %1074  ;;  %v921_v35 = vmax.f32 %v872_v36, 0.0  ;;  %v2224_v45 = vld [vmem:[#allocation9_spill] sm:$0xff] }
 0x240   :  { %v1144_v51 = vmul.f32 %v1075_v22, %v920_v12  ;;  %v923_v33 = vmax.f32 %v878_v63, 0.0  ;;  %v1192_v12 = vstv %s2205_s6 }
 0x241   :  { %v1164_v38 = vadd.f32 %v1163_v14, %v1133_v27  ;;  %v881_v27 = vadd.f32 %v2225_v34, %v2224_v45 }
 0x243   :  { %v1165_v46 = vadd.f32 %v1164_v38, %v1134_v43  ;;  %v1080_v60 = vpop.permute.xlu1 %1079  ;;  %v884_v43 = vadd.f32 %v2154_v32, %v2226_v52  ;;  %v2229_v32 = vld [vmem:[#allocation13_spill] sm:$0xff] }
 0x244   :  { %v1145_v55 = vmul.f32 %v1080_v60, %v921_v35  ;;  %v1100_v25 = vpop.permute.xlu2 %1099 }
 0x245   :  { %v1166_v1 = vadd.f32 %v1165_v46, %v1135_v57  ;;  %v924_v57 = vmax.f32 %v881_v27, 0.0  ;;  %v887_v46 = vadd.f32 %v2162_v56, %v2227_v28 }
 0x247   :  { %v1167_v59 = vadd.f32 %v1166_v1, %v1136_v16  ;;  %v1090_v37 = vpop.permute.xlu0 %1089  ;;  %v925_v16 = vmax.f32 %v884_v43, 0.0  ;;  %v2228_v1 = vld [vmem:[#allocation12_spill] sm:$0xff]  ;;  %v926_v22 = vmax.f32 %v887_v46, 0.0 }
 0x248   :  { %v1147_v50 = vmul.f32 %v1090_v37, %v923_v33  ;;  %v890_v42 = vadd.f32 %v889_v10, %v2228_v1 }
 0x249   :  { %v1168_v15 = vadd.f32 %v1167_v59, %v1137_v53  ;;  %v895_v53 = vpop.f32.mrf.mxu3  ;;  %v1149_v44 = vmul.f32 %v1100_v25, %v925_v16 }
 0x24a   :  { %v896_v61 = vadd.f32 %v895_v53, %v2230_v19 }
 0x24b   :  { %v1169_v29 = vadd.f32 %v1168_v15, %v1138_v17  ;;  %v1095_v39 = vpop.permute.xlu1 %1094  ;;  %v893_v17 = vadd.f32 %v892_v54, %v2229_v32  ;;  %v927_v15 = vmax.f32 %v890_v42, 0.0 }
 0x24c   :  { %v1148_v59 = vmul.f32 %v1095_v39, %v924_v57  ;;  %v929_v8 = vmax.f32 %v896_v61, 0.0 }
 0x24d   :  { %v1170_v21 = vadd.f32 %v1169_v29, %v1139_v62  ;;  %v928_v29 = vmax.f32 %v893_v17, 0.0 }
 0x24f   :  { %v1171_v31 = vadd.f32 %v1170_v21, %v1140_v18  ;;  %v1105_v6 = vpop.permute.xlu0 %1104  ;;  %v1115_v21 = vpop.permute.xlu2 %1114 }
 0x250   :  { %v1150_v56 = vmul.f32 %v1105_v6, %v926_v22  ;;  %v1152_v60 = vmul.f32 %v1115_v21, %v928_v29 }
 0x251   :  { %v1172_v30 = vadd.f32 %v1171_v31, %v1141_v9 }
 0x253   :  { %v1173_v48 = vadd.f32 %v1172_v30, %v1142_v11  ;;  %v1110_v18 = vpop.permute.xlu1 %1109 }
 0x254   :  { %v1151_v23 = vmul.f32 %v1110_v18, %v927_v15 }
 0x255   :  { %v1174_v14 = vadd.f32 %v1173_v48, %v1143_v20 }
 0x257   :  { %v1175_v38 = vadd.f32 %v1174_v14, %v1144_v51  ;;  %v1120_v49 = vpop.permute.xlu0 %1119 }
 0x258   :  { %v1153_v31 = vmul.f32 %v1120_v49, %v929_v8 }
 0x259   :  { %v1176_v40 = vadd.f32 %v1175_v38, %v1145_v55 }
 0x25b   :  { %v1177_v5 = vadd.f32 %v1176_v40, %v1146_v58 }
 0x25d   :  { %v1178_v3 = vadd.f32 %v1177_v5, %v1147_v50 }
 0x25f   :  { %v1179_v62 = vadd.f32 %v1178_v3, %v1148_v59 }
 0x261   :  { %v1180_v7 = vadd.f32 %v1179_v62, %v1149_v44 }
 0x263   :  { %v1181_v10 = vadd.f32 %v1180_v7, %v1150_v56 }
 0x265   :  { %v1182_v9 = vadd.f32 %v1181_v10, %v1151_v23 }
 0x267   :  { %v1183_v26 = vadd.f32 %v1182_v9, %v1152_v60 }
 0x269   :  { %v1184_v36 = vadd.f32 %v1183_v26, %v1153_v31 }
 0x26b   :  { %v1185_v41 = vrot.slane %v1184_v36, 4 }
 0x26d   :  { %v1186_v4 = vadd.f32 %v1185_v41, %v1184_v36 }
 0x26f   :  { %v1187_v24 = vrot.slane %v1186_v4, 2 }
 0x271   :  { %v1188_v2 = vadd.f32 %v1187_v24, %v1186_v4 }
 0x273   :  { %v1189_v11 = vrot.slane %v1188_v2, 1 }
 0x275   :  { %v1190_v30 = vadd.f32 %v1189_v11, %v1188_v2 }
 0x277   :  { %v1193_v37 = vadd.f32 %v1192_v12, %v1190_v30 }
 0x279   :  { %1194 = vst [vmem:[#allocation3] sm:$0x1] %v1193_v37 }
 0x27a   :  { %1205 = dma.vmem_to_hbm [thread:$0]  %s1201_s22, 16, %s1203_s25, [#allocation4]  }
 0x27b   :  { %1303 = dma.done.wait [#allocation4], 16  }
 0x27c   :  { %1304 = vsyncadd [#allocation4], 4294967280 }
 0x27d   :  { %1210 = vsyncpa [#allocation4], 1 }

</bundles_post_ra>
